<compile_context>
chip_gen: v7x
topology: tpu7x:2x2x1
jax: 0.10.0
libtpu: 0.0.40
codegen_flags: <defaults>
</compile_context>

<pallas_src>
import functools

import jax
import jax.numpy as jnp
from jax.experimental import pallas as pl
from jax.experimental.pallas import tpu as pltpu


# ----------------------------------------------------------------------------
# Fused kernel: im2col conv matmul + bias + ReLU + global-avg-pool + all heads
# ----------------------------------------------------------------------------
def _fused_kernel(patch_ref, wc_ref, bc_ref, wf_ref, bf_ref, o_ref):
    # patch_ref: (B*H*W, 9*Cin)   im2col patch matrix
    # wc_ref:    (9*Cin, Cmid)    conv weight, flattened (kH, kW, Cin) -> rows
    # bc_ref:    (1, Cmid)        conv bias
    # wf_ref:    (Cmid, Kn)       all classifier weights, Kn = K * n_classes
    # bf_ref:    (1, Kn)          all classifier biases
    # o_ref:     (B, Kn)          fused logits (lane-dense slab)
    B = o_ref.shape[0]
    HW = patch_ref.shape[0] // B

    # conv3x3 as one MXU matmul
    acc = jnp.dot(patch_ref[...], wc_ref[...],
                  preferred_element_type=jnp.float32)
    acc = jnp.maximum(acc + bc_ref[...], 0.0)               # bias + ReLU (adapter)

    # global average pool: one reshaped reduction over the spatial axis
    feat = jnp.mean(acc.reshape(B, HW, acc.shape[-1]), axis=1)   # (B, Cmid)

    # all branch classifiers in a single matmul, bias fused into the epilogue
    o_ref[...] = (jnp.dot(feat, wf_ref[...],
                          preferred_element_type=jnp.float32) + bf_ref[...])


# ----------------------------------------------------------------------------
# Wrapper: build im2col patches (XLA), launch one fused pallas_call
# ----------------------------------------------------------------------------
@jax.jit
def _forward_fused(x_nhwc, conv_w_mat, conv_b_row, fc_w_mat, fc_b_row):
    B, H, W, Cin = x_nhwc.shape
    Cmid = conv_w_mat.shape[-1]
    Kn = fc_w_mat.shape[-1]

    # im2col: pad=1, 3x3 taps stacked on the channel axis in (dh, dw, Cin) order
    xpad = jnp.pad(x_nhwc, ((0, 0), (1, 1), (1, 1), (0, 0)))
    patches = jnp.concatenate(
        [xpad[:, dh:dh + H, dw:dw + W, :] for dh in range(3) for dw in range(3)],
        axis=-1,
    ).reshape(B * H * W, 9 * Cin)

    return pl.pallas_call(
        _fused_kernel,
        out_shape=jax.ShapeDtypeStruct((B, Kn), jnp.float32),
        grid=(1,),
        in_specs=[
            pl.BlockSpec((B * H * W, 9 * Cin), lambda i: (0, 0)),
            pl.BlockSpec((9 * Cin, Cmid), lambda i: (0, 0)),
            pl.BlockSpec((1, Cmid), lambda i: (0, 0)),
            pl.BlockSpec((Cmid, Kn), lambda i: (0, 0)),
            pl.BlockSpec((1, Kn), lambda i: (0, 0)),
        ],
        out_specs=pl.BlockSpec((B, Kn), lambda i: (0, 0)),
        compiler_params=pltpu.CompilerParams(
            dimension_semantics=("arbitrary",)),
    )(patches, conv_w_mat, conv_b_row, fc_w_mat, fc_b_row)


class BranchingNetworkPallas:
    def __init__(self, n_classes, n_branches, c_in=4, c_mid=32, seed=0):
        self.n_classes = n_classes
        self.n_branches = n_branches
        key = jax.random.PRNGKey(seed)
        k_cw, k_cb, k_fw, k_fb = jax.random.split(key, 4)

        # conv weight in PyTorch OIHW convention (kept for the reference)
        conv_w_oihw = 0.1 * jax.random.normal(k_cw, (c_mid, c_in, 3, 3),
                                              jnp.float32)
        self.conv_w_oihw = conv_w_oihw
        # kernel form: (kH, kW, Cin, Cout) -> (9*Cin, Cmid), matches patch order
        self.conv_w_mat = jnp.transpose(conv_w_oihw, (2, 3, 1, 0)).reshape(
            9 * c_in, c_mid)
        self.conv_b = 0.1 * jax.random.normal(k_cb, (c_mid,), jnp.float32)
        self.conv_b_row = self.conv_b.reshape(1, c_mid)

        # per-branch classifier weights (reset_parameters => independent init)
        self.fc_w = 0.1 * jax.random.normal(
            k_fw, (n_branches, n_classes, c_mid), jnp.float32)
        self.fc_b = 0.1 * jax.random.normal(
            k_fb, (n_branches, n_classes), jnp.float32)

        # pre-transposed forms (done once at parameter setup, off the hot path)
        # W_all[c, k*nc + n] = fc_w[k, n, c]
        self.fc_w_all = jnp.transpose(self.fc_w, (2, 0, 1)).reshape(
            c_mid, n_branches * n_classes)
        self.fc_b_all = self.fc_b.reshape(1, n_branches * n_classes)
        self.fc_w_per = jnp.transpose(self.fc_w, (0, 2, 1))   # (K, Cmid, nc)

    def __call__(self, x_nchw, branch_num=None):
        # x_nchw: (B, Cin, H, W) float32 (PyTorch layout at the boundary)
        B = x_nchw.shape[0]
        x_nhwc = jnp.transpose(x_nchw, (0, 2, 3, 1))
        if branch_num is None:
            logits = _forward_fused(x_nhwc, self.conv_w_mat, self.conv_b_row,
                                    self.fc_w_all, self.fc_b_all)
            return logits.reshape(B, self.n_branches, self.n_classes)
        w = self.fc_w_per[branch_num]                          # (Cmid, nc)
        b = self.fc_b[branch_num].reshape(1, self.n_classes)   # (1, nc)
        logits = _forward_fused(x_nhwc, self.conv_w_mat, self.conv_b_row, w, b)
        return logits.reshape(B, 1, self.n_classes)


# ----------------------------------------------------------------------------
# Pure-JAX reference for correctness check
# ----------------------------------------------------------------------------
def _reference(x_nchw, conv_w_oihw, conv_b, fc_w, fc_b, branch_num=None):
    y = jax.lax.conv_general_dilated(
        x_nchw, conv_w_oihw, window_strides=(1, 1), padding="SAME",
        dimension_numbers=("NCHW", "OIHW", "NCHW"))
    y = y + conv_b[None, :, None, None]
    y = jnp.maximum(y, 0.0)
    feat = jnp.mean(y, axis=(2, 3))                                   # (B, Cmid)
    if branch_num is None:
        return jnp.einsum("bc,knc->bkn", feat, fc_w) + fc_b[None]
    return (feat @ fc_w[branch_num].T + fc_b[branch_num])[:, None, :]


if __name__ == "__main__":
    B, C_IN, H, W = 2, 4, 16, 16
    N_CLASSES, N_BRANCHES, C_MID = 10, 3, 32

    net = BranchingNetworkPallas(N_CLASSES, N_BRANCHES, c_in=C_IN, c_mid=C_MID)

    key = jax.random.PRNGKey(0)
    x = jax.random.normal(key, (B, C_IN, H, W), jnp.float32)

    out = jax.block_until_ready(net(x))                    # (B, K, n_classes)
    out_b1 = jax.block_until_ready(net(x, branch_num=1))   # (B, 1, n_classes)

    ref = _reference(x, net.conv_w_oihw, net.conv_b, net.fc_w, net.fc_b)
    ref_b1 = _reference(x, net.conv_w_oihw, net.conv_b, net.fc_w, net.fc_b, 1)

    assert out.shape == (B, N_BRANCHES, N_CLASSES), out.shape
    assert out_b1.shape == (B, 1, N_CLASSES), out_b1.shape
    assert jnp.allclose(out, ref, atol=1e-4, rtol=1e-4)
    assert jnp.allclose(out_b1, ref_b1, atol=1e-4, rtol=1e-4)

    print("KERNEL_OK")
</pallas_src>

<mosaic_0001>
module attributes {stable_mosaic.version = 11 : i64} {
  func.func @_fused_kernel(%arg0: i32, %arg1: memref<512x36xf32, #tpu.memory_space<vmem>>, %arg2: memref<36x32xf32, #tpu.memory_space<vmem>>, %arg3: memref<1x32xf32, #tpu.memory_space<vmem>>, %arg4: memref<32x30xf32, #tpu.memory_space<vmem>>, %arg5: memref<1x30xf32, #tpu.memory_space<vmem>>, %arg6: memref<2x30xf32, #tpu.memory_space<vmem>>) attributes {dimension_semantics = [#tpu.dimension_semantics<arbitrary>], iteration_bounds = array<i64: 1>, scalar_prefetch = 0 : i64, scratch_operands = 0 : i64, tpu.core_type = #tpu.core_type<tc>, window_params = [{pipeline_mode = #tpu.pipeline_mode<synchronous>, transform_indices = @transform_0, window_bounds = array<i64: 512, 36>}, {pipeline_mode = #tpu.pipeline_mode<synchronous>, transform_indices = @transform_1, window_bounds = array<i64: 36, 32>}, {pipeline_mode = #tpu.pipeline_mode<synchronous>, transform_indices = @transform_2, window_bounds = array<i64: 1, 32>}, {pipeline_mode = #tpu.pipeline_mode<synchronous>, transform_indices = @transform_3, window_bounds = array<i64: 32, 30>}, {pipeline_mode = #tpu.pipeline_mode<synchronous>, transform_indices = @transform_4, window_bounds = array<i64: 1, 30>}, {pipeline_mode = #tpu.pipeline_mode<synchronous>, transform_indices = @transform_5, window_bounds = array<i64: 2, 30>}]} {
    %c0 = arith.constant 0 : index
    %c0_0 = arith.constant 0 : index
    %0 = vector.load %arg1[%c0, %c0_0] : memref<512x36xf32, #tpu.memory_space<vmem>>, vector<512x36xf32>
    %c0_1 = arith.constant 0 : index
    %c0_2 = arith.constant 0 : index
    %1 = vector.load %arg2[%c0_1, %c0_2] : memref<36x32xf32, #tpu.memory_space<vmem>>, vector<36x32xf32>
    %cst = arith.constant dense<0.000000e+00> : vector<512x32xf32>
    %2 = tpu.matmul %0, %1, %cst {dimension_numbers = #tpu.dot_dimension_numbers<[1], [0], [0], [1], [0, 0, 1, 1], [], []>} : vector<512x36xf32>, vector<36x32xf32>, vector<512x32xf32> -> vector<512x32xf32>
    %c0_3 = arith.constant 0 : index
    %c0_4 = arith.constant 0 : index
    %3 = vector.load %arg3[%c0_3, %c0_4] : memref<1x32xf32, #tpu.memory_space<vmem>>, vector<1x32xf32>
    %4 = vector.broadcast %3 : vector<1x32xf32> to vector<512x32xf32>
    %5 = arith.addf %2, %4 : vector<512x32xf32>
    %cst_5 = arith.constant 0.000000e+00 : f32
    %6 = vector.broadcast %cst_5 : f32 to vector<512x32xf32>
    %7 = arith.maximumf %5, %6 : vector<512x32xf32>
    %8 = vector.shape_cast %7 : vector<512x32xf32> to vector<2x256x32xf32>
    %cst_6 = arith.constant dense<0.000000e+00> : vector<2x32xf32>
    %9 = vector.multi_reduction <add>, %8, %cst_6 [1] : vector<2x256x32xf32> to vector<2x32xf32>
    %cst_7 = arith.constant 2.560000e+02 : f32
    %10 = vector.broadcast %cst_7 : f32 to vector<2x32xf32>
    %11 = arith.divf %9, %10 : vector<2x32xf32>
    %c0_8 = arith.constant 0 : index
    %c0_9 = arith.constant 0 : index
    %12 = vector.load %arg4[%c0_8, %c0_9] : memref<32x30xf32, #tpu.memory_space<vmem>>, vector<32x30xf32>
    %cst_10 = arith.constant dense<0.000000e+00> : vector<2x30xf32>
    %13 = tpu.matmul %11, %12, %cst_10 {dimension_numbers = #tpu.dot_dimension_numbers<[1], [0], [0], [1], [0, 0, 1, 1], [], []>} : vector<2x32xf32>, vector<32x30xf32>, vector<2x30xf32> -> vector<2x30xf32>
    %c0_11 = arith.constant 0 : index
    %c0_12 = arith.constant 0 : index
    %14 = vector.load %arg5[%c0_11, %c0_12] : memref<1x30xf32, #tpu.memory_space<vmem>>, vector<1x30xf32>
    %15 = vector.broadcast %14 : vector<1x30xf32> to vector<2x30xf32>
    %16 = arith.addf %13, %15 : vector<2x30xf32>
    %c0_13 = arith.constant 0 : index
    %c0_14 = arith.constant 0 : index
    %17 = vector.load %arg6[%c0_13, %c0_14] : memref<2x30xf32, #tpu.memory_space<vmem>>, vector<2x30xf32>
    tpu.vector_store %arg6[%c0_13, %c0_14], %16 {strides = array<i32>} : memref<2x30xf32, #tpu.memory_space<vmem>>, vector<2x30xf32>,
    return
  }
  func.func @transform_0(%arg0: i32) -> (i32, i32) {
    %c0_i32 = arith.constant 0 : i32
    %c0_i32_0 = arith.constant 0 : i32
    %c0_i32_1 = arith.constant 0 : i32
    return %c0_i32, %c0_i32_0 : i32, i32
  }
  func.func @transform_1(%arg0: i32) -> (i32, i32) {
    %c0_i32 = arith.constant 0 : i32
    %c0_i32_0 = arith.constant 0 : i32
    %c0_i32_1 = arith.constant 0 : i32
    return %c0_i32, %c0_i32_0 : i32, i32
  }
  func.func @transform_2(%arg0: i32) -> (i32, i32) {
    %c0_i32 = arith.constant 0 : i32
    %c0_i32_0 = arith.constant 0 : i32
    %c0_i32_1 = arith.constant 0 : i32
    return %c0_i32, %c0_i32_0 : i32, i32
  }
  func.func @transform_3(%arg0: i32) -> (i32, i32) {
    %c0_i32 = arith.constant 0 : i32
    %c0_i32_0 = arith.constant 0 : i32
    %c0_i32_1 = arith.constant 0 : i32
    return %c0_i32, %c0_i32_0 : i32, i32
  }
  func.func @transform_4(%arg0: i32) -> (i32, i32) {
    %c0_i32 = arith.constant 0 : i32
    %c0_i32_0 = arith.constant 0 : i32
    %c0_i32_1 = arith.constant 0 : i32
    return %c0_i32, %c0_i32_0 : i32, i32
  }
  func.func @transform_5(%arg0: i32) -> (i32, i32) {
    %c0_i32 = arith.constant 0 : i32
    %c0_i32_0 = arith.constant 0 : i32
    %c0_i32_1 = arith.constant 0 : i32
    return %c0_i32, %c0_i32_0 : i32, i32
  }
}

</mosaic_0001>

<bundles_post_ra>
// kernel: _forward_fused.1
= control target key start
LH: loop header
LB: loop body
LE: loop exit
PB: predicated region body
PF: predicated region fallthrough
CT: control target
= control target key end

     0   :  { %vm97_vm0 = vcmask 293888   ;;  %vm290_vm1 = vcmask 1043456   ;;  %s1855_s0 = inlined_call_operand.vmem [shape: f32[512,36], index: 0, kind: input, shape index: {}]   ;;  %s1856_s1 = inlined_call_operand.vmem [shape: f32[36,32], index: 1, kind: input, shape index: {}]   ;;  %s1857_s2 = inlined_call_operand.vmem [shape: f32[1,32], index: 2, kind: input, shape index: {}]   ;;  %s1858_s3 = inlined_call_operand.vmem [shape: f32[32,30], index: 3, kind: input, shape index: {}]   ;;  %s1859_s4 = inlined_call_operand.vmem [shape: f32[1,30], index: 4, kind: input, shape index: {}]   ;;  %s1860_s5 = inlined_call_operand.hbm [shape: f32[2,30], index: 5, kind: output, shape index: {}]  }
   0x1   :  { %v85_v0 = vld [vmem:[%s1856_s1] sm:$0xff]  ;;  %v86_v1 = vld [vmem:[%s1856_s1 + $0x8] sm:$0xff]  ;;  %v87_v2 = vld [vmem:[%s1856_s1 + $0x10] sm:$0xff] }
   0x2   :  { %v1247_v3 = vpack.c.bf16 %v86_v1, %v85_v0  ;;  %v88_v4 = vld [vmem:[%s1856_s1 + $0x18] sm:$0xff]  ;;  %v21_v5 = vld [vmem:[%s1855_s0] sm:$0xff]  ;;  %v22_v8 = vld [vmem:[%s1855_s0 + $0x8] sm:$0xff] }
   0x3   :  { %v1251_v6 = vpack.c.bf16 %v88_v4, %v87_v2  ;;  %1140 = vmatprep.mubr.msk.f32.mxu0 %vm97_vm0, %v21_v5  ;;  %v89_v7 = vld [vmem:[%s1856_s1 + $0x20] sm:$0xf]  ;;  %v23_v9 = vld [vmem:[%s1855_s0 + $0x10] sm:$0xff]  ;;  %v56_v11 = vld [vmem:[%s1855_s0 + $0x118] sm:$0xff] }
   0x4   :  { %1248 = vmatprep.subr.bf16.mxu0 %v1247_v3  ;;  %1261 = vmatprep.subr.bf16.mxu1 %v1247_v3  ;;  %v55_v10 = vld [vmem:[%s1855_s0 + $0x110] sm:$0xff]  ;;  %v57_v12 = vld [vmem:[%s1855_s0 + $0x120] sm:$0xff]  ;;  %v24_v13 = vld [vmem:[%s1855_s0 + $0x18] sm:$0xff] }
   0x5   :  { %1250 = vmatpush3.bf16.msra.mxu0 %v1247_v3  ;;  %1264 = vmatpush3.bf16.msra.mxu1 %v1247_v3  ;;  %v25_v14 = vld [vmem:[%s1855_s0 + $0x20] sm:$0xff]  ;;  %v58_v15 = vld [vmem:[%s1855_s0 + $0x128] sm:$0xff]  ;;  %v59_v16 = vld [vmem:[%s1855_s0 + $0x130] sm:$0xff] }
   0x6   :  { %1252 = vmatprep.subr.bf16.mxu0 %v1251_v6  ;;  %1262 = vmatprep.subr.bf16.mxu1 %v1251_v6  ;;  %v26_v17 = vld [vmem:[%s1855_s0 + $0x28] sm:$0xff]  ;;  %v27_v18 = vld [vmem:[%s1855_s0 + $0x30] sm:$0xff]  ;;  %v60_v19 = vld [vmem:[%s1855_s0 + $0x138] sm:$0xff] }
   0x7   :  { %1191 = vmatprep.mubr.msk.f32.mxu1 %vm97_vm0, %v55_v10  ;;  %v61_v20 = vld [vmem:[%s1855_s0 + $0x140] sm:$0xff]  ;;  %v28_v21 = vld [vmem:[%s1855_s0 + $0x38] sm:$0xff] }
   0x8   :  { %v29_v22 = vld [vmem:[%s1855_s0 + $0x40] sm:$0xff] }
   0x9   :  { %1254 = vmatpush3.bf16.msra.mxu0 %v1251_v6  ;;  %1265 = vmatpush3.bf16.msra.mxu1 %v1251_v6 }
   0xa   :  { %1138 = vmatprep.subr.msk.mxu0 %vm290_vm1, %v89_v7  ;;  %1263 = vmatprep.subr.msk.mxu1 %vm290_vm1, %v89_v7 }
   0xd   :  { %1139 = vmatpush3.msk.msra.mxu0 %vm290_vm1, %v89_v7  ;;  %1266 = vmatpush3.msk.msra.mxu1 %vm290_vm1, %v89_v7 }
   0xe   :  { %1141 = vmatmul.mubr.msk.f32.vlgmr.msra.gmra.mrb[0].mxu0 %vm97_vm0, %v22_v8  ;;  %1192 = vmatmul.mubr.msk.f32.vlgmr.msra.gmra.mrb[0].mxu1 %vm97_vm0, %v56_v11 }
   0xf   :  { %1143 = vmatprep.mubr.msk.f32.mxu0 %vm97_vm0, %v23_v9  ;;  %1194 = vmatprep.mubr.msk.f32.mxu1 %vm97_vm0, %v57_v12 }
  0x12   :  { %1144 = vmatmul.mubr.msk.f32.gmra.mrb[2].mxu0 %vm97_vm0, %v24_v13  ;;  %1195 = vmatmul.mubr.msk.f32.gmra.mrb[2].mxu1 %vm97_vm0, %v58_v15 }
  0x13   :  { %1146 = vmatprep.mubr.msk.f32.mxu0 %vm97_vm0, %v25_v14  ;;  %1197 = vmatprep.mubr.msk.f32.mxu1 %vm97_vm0, %v59_v16 }
  0x16   :  { %1147 = vmatmul.mubr.msk.f32.gmra.mrb[4].mxu0 %vm97_vm0, %v26_v17  ;;  %1198 = vmatmul.mubr.msk.f32.gmra.mrb[4].mxu1 %vm97_vm0, %v60_v19 }
  0x17   :  { %1149 = vmatprep.mubr.msk.f32.mxu0 %vm97_vm0, %v27_v18 }
  0x18   :  { %10 = vsyncpa [#allocation3], 0  ;;  %1200 = vmatprep.mubr.msk.f32.mxu1 %vm97_vm0, %v61_v20  ;;  %v62_v23 = vld [vmem:[%s1855_s0 + $0x148] sm:$0xff]  ;;  %v63_v24 = vld [vmem:[%s1855_s0 + $0x150] sm:$0xff]  ;;  %v1295_v9 = vmov 0.0|0.0   ;;  %vm743_vm2 = vcmask 261120  }
  0x19   :  { %v30_v25 = vld [vmem:[%s1855_s0 + $0x48] sm:$0xff]  ;;  %v31_v26 = vld [vmem:[%s1855_s0 + $0x50] sm:$0xff]  ;;  %v64_v27 = vld [vmem:[%s1855_s0 + $0x158] sm:$0xff]  ;;  %1255 = vmatprep.subr.bf16.mxu1 %v1295_v9  ;;  %vm1296_vm3 = vmmov 0   ;;  %vm898_vm4 = vcmask 1041409   ;;  %s1298_s10 = smov [#allocation2]  }
  0x1a   :  { %1150 = vmatmul.mubr.msk.f32.gmra.mrb[6].mxu0 %vm97_vm0, %v28_v21  ;;  %1201 = vmatmul.mubr.msk.f32.gmra.mrb[6].mxu1 %vm97_vm0, %v62_v23  ;;  %v65_v28 = vld [vmem:[%s1855_s0 + $0x160] sm:$0xff]  ;;  %v32_v29 = vld [vmem:[%s1855_s0 + $0x58] sm:$0xff]  ;;  %v66_v31 = vld [vmem:[%s1855_s0 + $0x168] sm:$0xff]  ;;  %s980_s1 = sshll.u32 %s1298_s10, 4  ;;  %vm972_vm5 = vcmask 238592   ;;  %s981_s1 = int_to_ptr.vmem [resolvable:$true] %s980_s1 }
  0x1b   :  { %1152 = vmatprep.mubr.msk.f32.mxu0 %vm97_vm0, %v29_v22  ;;  %1203 = vmatprep.mubr.msk.f32.mxu1 %vm97_vm0, %v63_v24  ;;  %v33_v30 = vld [vmem:[%s1855_s0 + $0x60] sm:$0xff]  ;;  %v67_v32 = vld [vmem:[%s1855_s0 + $0x170] sm:$0xff]  ;;  %v34_v33 = vld [vmem:[%s1855_s0 + $0x68] sm:$0xff]  ;;  %s1271_s11 = scalar_lea.vmem %s981_s1, 32  ;;  %p1276_p1 = scmp.lt.s32.totalorder %s981_s1, %s981_s1 }
  0x1c   :  { %v35_v34 = vld [vmem:[%s1855_s0 + $0x70] sm:$0xff]  ;;  %v68_v35 = vld [vmem:[%s1855_s0 + $0x178] sm:$0xff]  ;;  %v69_v36 = vld [vmem:[%s1855_s0 + $0x180] sm:$0xff]  ;;  %p1272_p0 = scmp.ne.s32.totalorder %s981_s1, %s1271_s11  ;;  %p1277_p2 = scmp.lt.s32.totalorder %s1271_s11, %s1271_s11 }
  0x1d   :  { %v36_v37 = vld [vmem:[%s1855_s0 + $0x78] sm:$0xff]  ;;  %v37_v38 = vld [vmem:[%s1855_s0 + $0x80] sm:$0xff]  ;;  %v70_v39 = vld [vmem:[%s1855_s0 + $0x188] sm:$0xff] }
  0x1e   :  { %1153 = vmatmul.mubr.msk.f32.gmra.mrb[8].mxu0 %vm97_vm0, %v30_v25  ;;  %1204 = vmatmul.mubr.msk.f32.gmra.mrb[8].mxu1 %vm97_vm0, %v64_v27  ;;  %v71_v40 = vld [vmem:[%s1855_s0 + $0x190] sm:$0xff]  ;;  %v38_v41 = vld [vmem:[%s1855_s0 + $0x88] sm:$0xff]  ;;  %v72_v43 = vld [vmem:[%s1855_s0 + $0x198] sm:$0xff]  ;;  %p1278_p3 = por %p1277_p2, %p1276_p1 }
  0x1f   :  { %1155 = vmatprep.mubr.msk.f32.mxu0 %vm97_vm0, %v31_v26  ;;  %1206 = vmatprep.mubr.msk.f32.mxu1 %vm97_vm0, %v65_v28  ;;  %v39_v42 = vld [vmem:[%s1855_s0 + $0x90] sm:$0xff]  ;;  %v73_v44 = vld [vmem:[%s1855_s0 + $0x1a0] sm:$0xff]  ;;  %v40_v45 = vld [vmem:[%s1855_s0 + $0x98] sm:$0xff] }
  0x20   :  { %v41_v46 = vld [vmem:[%s1855_s0 + $0xa0] sm:$0xff]  ;;  %v74_v47 = vld [vmem:[%s1855_s0 + $0x1a8] sm:$0xff]  ;;  %v75_v48 = vld [vmem:[%s1855_s0 + $0x1b0] sm:$0xff]  ;;  %p1279_p4 = pnand %p1278_p3, %p1272_p0 }
  0x21   :  { %v42_v49 = vld [vmem:[%s1855_s0 + $0xa8] sm:$0xff]  ;;  %v43_v50 = vld [vmem:[%s1855_s0 + $0xb0] sm:$0xff]  ;;  %v76_v51 = vld [vmem:[%s1855_s0 + $0x1b8] sm:$0xff] }
  0x22   :  { %1156 = vmatmul.mubr.msk.f32.gmra.mrb[10].mxu0 %vm97_vm0, %v32_v29  ;;  %1207 = vmatmul.mubr.msk.f32.gmra.mrb[10].mxu1 %vm97_vm0, %v66_v31  ;;  %v77_v52 = vld [vmem:[%s1855_s0 + $0x1c0] sm:$0xff]  ;;  %v44_v53 = vld [vmem:[%s1855_s0 + $0xb8] sm:$0xff]  ;;  %v78_v55 = vld [vmem:[%s1855_s0 + $0x1c8] sm:$0xff] }
  0x23   :  { %1158 = vmatprep.mubr.msk.f32.mxu0 %vm97_vm0, %v33_v30  ;;  %1209 = vmatprep.mubr.msk.f32.mxu1 %vm97_vm0, %v67_v32  ;;  %v45_v54 = vld [vmem:[%s1855_s0 + $0xc0] sm:$0xff]  ;;  %v79_v56 = vld [vmem:[%s1855_s0 + $0x1d0] sm:$0xff]  ;;  %v46_v57 = vld [vmem:[%s1855_s0 + $0xc8] sm:$0xff] }
  0x24   :  { %v47_v58 = vld [vmem:[%s1855_s0 + $0xd0] sm:$0xff]  ;;  %v80_v59 = vld [vmem:[%s1855_s0 + $0x1d8] sm:$0xff]  ;;  %v81_v60 = vld [vmem:[%s1855_s0 + $0x1e0] sm:$0xff] }
  0x25   :  { %v48_v61 = vld [vmem:[%s1855_s0 + $0xd8] sm:$0xff]  ;;  %v49_v62 = vld [vmem:[%s1855_s0 + $0xe0] sm:$0xff]  ;;  %v82_v63 = vld [vmem:[%s1855_s0 + $0x1e8] sm:$0xff] }
  0x26   :  { %1159 = vmatmul.mubr.msk.f32.gmra.mrb[12].mxu0 %vm97_vm0, %v34_v33  ;;  %1210 = vmatmul.mubr.msk.f32.gmra.mrb[12].mxu1 %vm97_vm0, %v68_v35  ;;  %v83_v0 = vld [vmem:[%s1855_s0 + $0x1f0] sm:$0xff]  ;;  %v50_v1 = vld [vmem:[%s1855_s0 + $0xe8] sm:$0xff]  ;;  %v84_v3 = vld [vmem:[%s1855_s0 + $0x1f8] sm:$0xff] }
  0x27   :  { %1161 = vmatprep.mubr.msk.f32.mxu0 %vm97_vm0, %v35_v34  ;;  %1212 = vmatprep.mubr.msk.f32.mxu1 %vm97_vm0, %v69_v36  ;;  %v51_v2 = vld [vmem:[%s1855_s0 + $0xf0] sm:$0xff]  ;;  %v52_v4 = vld [vmem:[%s1855_s0 + $0xf8] sm:$0xff]  ;;  %v53_v5 = vld [vmem:[%s1855_s0 + $0x100] sm:$0xff] }
  0x28   :  { %v54_v6 = vld [vmem:[%s1855_s0 + $0x108] sm:$0xff]  ;;  %v885_v7 = vld [vmem:[%s1858_s3] sm:$0xff]  ;;  %v887_v11 = vld [vmem:[%s1858_s3 + $0x10] sm:$0xff] }
  0x29   :  { %v886_v8 = vld [vmem:[%s1858_s3 + $0x8] sm:$0xff]  ;;  %v888_v12 = vld [vmem:[%s1858_s3 + $0x18] sm:$0xff]  ;;  %v1615_v13 = vld [vmem:[%s1857_s2] ss:$0 sm:$0xff] }
  0x2a   :  { %1162 = vmatmul.mubr.msk.f32.gmra.mrb[14].mxu0 %vm97_vm0, %v36_v37  ;;  %1213 = vmatmul.mubr.msk.f32.gmra.mrb[14].mxu1 %vm97_vm0, %v70_v39  ;;  %v1256_v10 = vpack.c.bf16 %v886_v8, %v885_v7  ;;  %v1259_v14 = vpack.c.bf16 %v888_v12, %v887_v11 }
  0x2b   :  { %1164 = vmatprep.mubr.msk.f32.mxu0 %vm97_vm0, %v37_v38  ;;  %1215 = vmatprep.mubr.msk.f32.mxu1 %vm97_vm0, %v71_v40 }
  0x2c   :  { %1257 = vmatpush3.bf16.msra.mxu1 %v1256_v10 }
  0x2d   :  { %1258 = vmatprep.subr.bf16.mxu1 %v1295_v9  ;;  %v1297_v9 = vmov 0.0  }
  0x2e   :  { %1165 = vmatmul.mubr.msk.f32.gmra.mrb[16].mxu0 %vm97_vm0, %v38_v41  ;;  %1216 = vmatmul.mubr.msk.f32.gmra.mrb[16].mxu1 %vm97_vm0, %v72_v43 }
  0x2f   :  { %1167 = vmatprep.mubr.msk.f32.mxu0 %vm97_vm0, %v39_v42  ;;  %1218 = vmatprep.mubr.msk.f32.mxu1 %vm97_vm0, %v73_v44 }
  0x30   :  { %1260 = vmatpush3.bf16.msra.mxu1 %v1259_v14 }
  0x32   :  { %1168 = vmatmul.mubr.msk.f32.gmra.mrb[18].mxu0 %vm97_vm0, %v40_v45  ;;  %1219 = vmatmul.mubr.msk.f32.gmra.mrb[18].mxu1 %vm97_vm0, %v74_v47 }
  0x33   :  { %1170 = vmatprep.mubr.msk.f32.mxu0 %vm97_vm0, %v41_v46  ;;  %1221 = vmatprep.mubr.msk.f32.mxu1 %vm97_vm0, %v75_v48 }
  0x36   :  { %1171 = vmatmul.mubr.msk.f32.gmra.mrb[20].mxu0 %vm97_vm0, %v42_v49  ;;  %1222 = vmatmul.mubr.msk.f32.gmra.mrb[20].mxu1 %vm97_vm0, %v76_v51 }
  0x37   :  { %1173 = vmatprep.mubr.msk.f32.mxu0 %vm97_vm0, %v43_v50  ;;  %1224 = vmatprep.mubr.msk.f32.mxu1 %vm97_vm0, %v77_v52 }
  0x3a   :  { %1174 = vmatmul.mubr.msk.f32.gmra.mrb[22].mxu0 %vm97_vm0, %v44_v53  ;;  %1225 = vmatmul.mubr.msk.f32.gmra.mrb[22].mxu1 %vm97_vm0, %v78_v55 }
  0x3b   :  { %1176 = vmatprep.mubr.msk.f32.mxu0 %vm97_vm0, %v45_v54  ;;  %1227 = vmatprep.mubr.msk.f32.mxu1 %vm97_vm0, %v79_v56 }
  0x3e   :  { %1177 = vmatmul.mubr.msk.f32.gmra.mrb[24].mxu0 %vm97_vm0, %v46_v57  ;;  %1228 = vmatmul.mubr.msk.f32.gmra.mrb[24].mxu1 %vm97_vm0, %v80_v59 }
  0x3f   :  { %1179 = vmatprep.mubr.msk.f32.mxu0 %vm97_vm0, %v47_v58  ;;  %1230 = vmatprep.mubr.msk.f32.mxu1 %vm97_vm0, %v81_v60 }
  0x42   :  { %1180 = vmatmul.mubr.msk.f32.gmra.mrb[26].mxu0 %vm97_vm0, %v48_v61  ;;  %1231 = vmatmul.mubr.msk.f32.gmra.mrb[26].mxu1 %vm97_vm0, %v82_v63 }
  0x43   :  { %1182 = vmatprep.mubr.msk.f32.mxu0 %vm97_vm0, %v49_v62  ;;  %1233 = vmatprep.mubr.msk.f32.mxu1 %vm97_vm0, %v83_v0 }
  0x46   :  { %1183 = vmatmul.mubr.msk.f32.gmra.mrb[28].mxu0 %vm97_vm0, %v50_v1  ;;  %1234 = vmatmul.mubr.msk.f32.gmra.mrb[28].mxu1 %vm97_vm0, %v84_v3 }
  0x47   :  { %1185 = vmatprep.mubr.msk.f32.mxu0 %vm97_vm0, %v51_v2  ;;  %1244 = vmatprep.mubr.msk.f32.mxu1 %vm1296_vm3, %v1297_v9 }
  0x4a   :  { %1186 = vmatmul.mubr.msk.f32.gmra.mrb[30].mxu0 %vm97_vm0, %v52_v4 }
  0x4b   :  { %1188 = vmatprep.mubr.msk.f32.mxu0 %vm97_vm0, %v53_v5 }
  0x4e   :  { %1189 = vmatmul.mubr.msk.f32.gmra.mrb[32].mxu0 %vm97_vm0, %v54_v6 }
  0xe1   :  { %v1142_v15 = vpop.f32.mrb[0].mxu0  ;;  %v1619_v19 = vpop.f32.mrb[0].mxu1 }
  0xe2   :  { %v366_v16 = vadd.f32 %v1142_v15, %v1615_v13  ;;  %v360_v17 = vpop.f32.mrb[1].mxu0  ;;  %v1621_v21 = vpop.f32.mrb[1].mxu1 }
  0xe3   :  { %v361_v18 = vadd.f32 %v1615_v13, %v360_v17 }
  0xe4   :  { %v680_v20 = vmax.f32 %v366_v16, 0.0 }
  0xe5   :  { %v679_v22 = vmax.f32 %v361_v18, 0.0  ;;  %v1145_v23 = vpop.f32.mrb[2].mxu0  ;;  %v1627_v29 = vpop.f32.mrb[2].mxu1 }
  0xe6   :  { %v745_v24 = vsel %vm743_vm2, %v680_v20, 0.0  ;;  %v376_v25 = vadd.f32 %v1145_v23, %v1615_v13  ;;  %v370_v26 = vpop.f32.mrb[3].mxu0  ;;  %v1629_v31 = vpop.f32.mrb[3].mxu1 }
  0xe7   :  { %v744_v27 = vsel %vm743_vm2, %v679_v22, 0.0  ;;  %v371_v28 = vadd.f32 %v1615_v13, %v370_v26 }
  0xe8   :  { %v746_v30 = vadd.f32 %v745_v24, %v744_v27  ;;  %v682_v32 = vmax.f32 %v376_v25, 0.0 }
  0xe9   :  { %v681_v33 = vmax.f32 %v371_v28, 0.0  ;;  %v1148_v34 = vpop.f32.mrb[4].mxu0  ;;  %v1634_v39 = vpop.f32.mrb[4].mxu1 }
  0xea   :  { %v386_v35 = vadd.f32 %v1148_v34, %v1615_v13  ;;  %v380_v36 = vpop.f32.mrb[5].mxu0  ;;  %v1636_v41 = vpop.f32.mrb[5].mxu1  ;;  %v749_v42 = vsel %vm743_vm2, %v682_v32, 0.0 }
  0xeb   :  { %v747_v37 = vsel %vm743_vm2, %v681_v33, 0.0  ;;  %v381_v38 = vadd.f32 %v1615_v13, %v380_v36 }
  0xec   :  { %v748_v40 = vadd.f32 %v747_v37, %v746_v30  ;;  %v684_v43 = vmax.f32 %v386_v35, 0.0 }
  0xed   :  { %v683_v44 = vmax.f32 %v381_v38, 0.0  ;;  %v1151_v45 = vpop.f32.mrb[6].mxu0  ;;  %v1642_v51 = vpop.f32.mrb[6].mxu1 }
  0xee   :  { %v750_v46 = vadd.f32 %v749_v42, %v748_v40  ;;  %v396_v47 = vadd.f32 %v1151_v45, %v1615_v13  ;;  %v390_v48 = vpop.f32.mrb[7].mxu0  ;;  %v1644_v53 = vpop.f32.mrb[7].mxu1  ;;  %v753_v54 = vsel %vm743_vm2, %v684_v43, 0.0 }
  0xef   :  { %v751_v49 = vsel %vm743_vm2, %v683_v44, 0.0  ;;  %v391_v50 = vadd.f32 %v1615_v13, %v390_v48 }
  0xf0   :  { %v752_v52 = vadd.f32 %v751_v49, %v750_v46  ;;  %v686_v55 = vmax.f32 %v396_v47, 0.0 }
  0xf1   :  { %v685_v56 = vmax.f32 %v391_v50, 0.0  ;;  %v1154_v57 = vpop.f32.mrb[8].mxu0  ;;  %v1650_v63 = vpop.f32.mrb[8].mxu1 }
  0xf2   :  { %v754_v58 = vadd.f32 %v753_v54, %v752_v52  ;;  %v406_v59 = vadd.f32 %v1154_v57, %v1615_v13  ;;  %v400_v60 = vpop.f32.mrb[9].mxu0  ;;  %v1652_v1 = vpop.f32.mrb[9].mxu1  ;;  %v757_v2 = vsel %vm743_vm2, %v686_v55, 0.0 }
  0xf3   :  { %v755_v61 = vsel %vm743_vm2, %v685_v56, 0.0  ;;  %v401_v62 = vadd.f32 %v1615_v13, %v400_v60 }
  0xf4   :  { %v756_v0 = vadd.f32 %v755_v61, %v754_v58  ;;  %v688_v3 = vmax.f32 %v406_v59, 0.0 }
  0xf5   :  { %v687_v4 = vmax.f32 %v401_v62, 0.0  ;;  %v1157_v5 = vpop.f32.mrb[10].mxu0  ;;  %v1658_v12 = vpop.f32.mrb[10].mxu1 }
  0xf6   :  { %v758_v6 = vadd.f32 %v757_v2, %v756_v0  ;;  %v416_v7 = vadd.f32 %v1157_v5, %v1615_v13  ;;  %v410_v8 = vpop.f32.mrb[11].mxu0  ;;  %v1660_v15 = vpop.f32.mrb[11].mxu1  ;;  %v761_v16 = vsel %vm743_vm2, %v688_v3, 0.0 }
  0xf7   :  { %v759_v10 = vsel %vm743_vm2, %v687_v4, 0.0  ;;  %v411_v11 = vadd.f32 %v1615_v13, %v410_v8 }
  0xf8   :  { %v760_v14 = vadd.f32 %v759_v10, %v758_v6  ;;  %v690_v17 = vmax.f32 %v416_v7, 0.0 }
  0xf9   :  { %v689_v18 = vmax.f32 %v411_v11, 0.0  ;;  %v1160_v20 = vpop.f32.mrb[12].mxu0  ;;  %v1666_v27 = vpop.f32.mrb[12].mxu1 }
  0xfa   :  { %v762_v22 = vadd.f32 %v761_v16, %v760_v14  ;;  %v426_v23 = vadd.f32 %v1160_v20, %v1615_v13  ;;  %v420_v24 = vpop.f32.mrb[13].mxu0  ;;  %v1668_v30 = vpop.f32.mrb[13].mxu1  ;;  %v765_v32 = vsel %vm743_vm2, %v690_v17, 0.0 }
  0xfb   :  { %v763_v25 = vsel %vm743_vm2, %v689_v18, 0.0  ;;  %v421_v26 = vadd.f32 %v1615_v13, %v420_v24 }
  0xfc   :  { %v764_v28 = vadd.f32 %v763_v25, %v762_v22  ;;  %v692_v33 = vmax.f32 %v426_v23, 0.0 }
  0xfd   :  { %v691_v34 = vmax.f32 %v421_v26, 0.0  ;;  %v1163_v35 = vpop.f32.mrb[14].mxu0  ;;  %v1674_v43 = vpop.f32.mrb[14].mxu1 }
  0xfe   :  { %v766_v36 = vadd.f32 %v765_v32, %v764_v28  ;;  %v436_v37 = vadd.f32 %v1163_v35, %v1615_v13  ;;  %v430_v38 = vpop.f32.mrb[15].mxu0  ;;  %v1676_v45 = vpop.f32.mrb[15].mxu1  ;;  %v769_v46 = vsel %vm743_vm2, %v692_v33, 0.0 }
  0xff   :  { %v767_v40 = vsel %vm743_vm2, %v691_v34, 0.0  ;;  %v431_v42 = vadd.f32 %v1615_v13, %v430_v38 }
 0x100   :  { %v768_v44 = vadd.f32 %v767_v40, %v766_v36  ;;  %v694_v47 = vmax.f32 %v436_v37, 0.0 }
 0x101   :  { %v693_v48 = vmax.f32 %v431_v42, 0.0  ;;  %v1166_v49 = vpop.f32.mrb[16].mxu0  ;;  %v1682_v57 = vpop.f32.mrb[16].mxu1 }
 0x102   :  { %v770_v50 = vadd.f32 %v769_v46, %v768_v44  ;;  %v446_v52 = vadd.f32 %v1166_v49, %v1615_v13  ;;  %v440_v54 = vpop.f32.mrb[17].mxu0  ;;  %v1684_v59 = vpop.f32.mrb[17].mxu1  ;;  %v773_v60 = vsel %vm743_vm2, %v694_v47, 0.0 }
 0x103   :  { %v771_v55 = vsel %vm743_vm2, %v693_v48, 0.0  ;;  %v441_v56 = vadd.f32 %v1615_v13, %v440_v54 }
 0x104   :  { %v772_v58 = vadd.f32 %v771_v55, %v770_v50  ;;  %v696_v61 = vmax.f32 %v446_v52, 0.0 }
 0x105   :  { %v695_v62 = vmax.f32 %v441_v56, 0.0  ;;  %v1169_v0 = vpop.f32.mrb[18].mxu0  ;;  %v1690_v7 = vpop.f32.mrb[18].mxu1 }
 0x106   :  { %v774_v2 = vadd.f32 %v773_v60, %v772_v58  ;;  %v456_v3 = vadd.f32 %v1169_v0, %v1615_v13  ;;  %v450_v4 = vpop.f32.mrb[19].mxu0  ;;  %v1692_v9 = vpop.f32.mrb[19].mxu1  ;;  %v777_v10 = vsel %vm743_vm2, %v696_v61, 0.0 }
 0x107   :  { %v775_v5 = vsel %vm743_vm2, %v695_v62, 0.0  ;;  %v451_v6 = vadd.f32 %v1615_v13, %v450_v4 }
 0x108   :  { %v776_v8 = vadd.f32 %v775_v5, %v774_v2  ;;  %v698_v11 = vmax.f32 %v456_v3, 0.0 }
 0x109   :  { %v697_v14 = vmax.f32 %v451_v6, 0.0  ;;  %v1172_v16 = vpop.f32.mrb[20].mxu0  ;;  %v1698_v24 = vpop.f32.mrb[20].mxu1 }
 0x10a   :  { %v778_v17 = vadd.f32 %v777_v10, %v776_v8  ;;  %v466_v18 = vadd.f32 %v1172_v16, %v1615_v13  ;;  %v460_v20 = vpop.f32.mrb[21].mxu0  ;;  %v1700_v26 = vpop.f32.mrb[21].mxu1  ;;  %v781_v28 = vsel %vm743_vm2, %v698_v11, 0.0 }
 0x10b   :  { %v779_v22 = vsel %vm743_vm2, %v697_v14, 0.0  ;;  %v461_v23 = vadd.f32 %v1615_v13, %v460_v20 }
 0x10c   :  { %v780_v25 = vadd.f32 %v779_v22, %v778_v17  ;;  %v700_v32 = vmax.f32 %v466_v18, 0.0 }
 0x10d   :  { %v699_v33 = vmax.f32 %v461_v23, 0.0  ;;  %v1175_v34 = vpop.f32.mrb[22].mxu0  ;;  %v1706_v42 = vpop.f32.mrb[22].mxu1 }
 0x10e   :  { %v782_v35 = vadd.f32 %v781_v28, %v780_v25  ;;  %v476_v36 = vadd.f32 %v1175_v34, %v1615_v13  ;;  %v470_v37 = vpop.f32.mrb[23].mxu0  ;;  %v1708_v46 = vpop.f32.mrb[23].mxu1  ;;  %v785_v47 = vsel %vm743_vm2, %v700_v32, 0.0 }
 0x10f   :  { %v783_v38 = vsel %vm743_vm2, %v699_v33, 0.0  ;;  %v471_v40 = vadd.f32 %v1615_v13, %v470_v37 }
 0x110   :  { %v784_v44 = vadd.f32 %v783_v38, %v782_v35  ;;  %v702_v48 = vmax.f32 %v476_v36, 0.0 }
 0x111   :  { %v701_v49 = vmax.f32 %v471_v40, 0.0  ;;  %v1178_v50 = vpop.f32.mrb[24].mxu0  ;;  %v1714_v60 = vpop.f32.mrb[24].mxu1 }
 0x112   :  { %v786_v52 = vadd.f32 %v785_v47, %v784_v44  ;;  %v486_v54 = vadd.f32 %v1178_v50, %v1615_v13  ;;  %v480_v55 = vpop.f32.mrb[25].mxu0  ;;  %v1716_v62 = vpop.f32.mrb[25].mxu1  ;;  %v789_v0 = vsel %vm743_vm2, %v702_v48, 0.0 }
 0x113   :  { %v787_v56 = vsel %vm743_vm2, %v701_v49, 0.0  ;;  %v481_v58 = vadd.f32 %v1615_v13, %v480_v55  ;;  %v531_v55 = vadd.f32 %v1615_v13, %v1621_v21  ;;  %v541_v21 = vadd.f32 %v1615_v13, %v1629_v31 }
 0x114   :  { %v788_v61 = vadd.f32 %v787_v56, %v786_v52  ;;  %v704_v2 = vmax.f32 %v486_v54, 0.0  ;;  %v551_v31 = vadd.f32 %v1615_v13, %v1636_v41  ;;  %v566_v41 = vadd.f32 %v1642_v51, %v1615_v13 }
 0x115   :  { %v703_v3 = vmax.f32 %v481_v58, 0.0  ;;  %v1181_v4 = vpop.f32.mrb[26].mxu0  ;;  %v1722_v14 = vpop.f32.mrb[26].mxu1  ;;  %v581_v51 = vadd.f32 %v1615_v13, %v1660_v15  ;;  %v596_v15 = vadd.f32 %v1666_v27, %v1615_v13  ;;  %v611_v27 = vadd.f32 %v1615_v13, %v1684_v59 }
 0x116   :  { %v790_v5 = vadd.f32 %v789_v0, %v788_v61  ;;  %v496_v6 = vadd.f32 %v1181_v4, %v1615_v13  ;;  %v490_v8 = vpop.f32.mrb[27].mxu0  ;;  %v1724_v17 = vpop.f32.mrb[27].mxu1  ;;  %v793_v18 = vsel %vm743_vm2, %v704_v2, 0.0  ;;  %v626_v59 = vadd.f32 %v1690_v7, %v1615_v13 }
 0x117   :  { %v791_v10 = vsel %vm743_vm2, %v703_v3, 0.0  ;;  %v491_v11 = vadd.f32 %v1615_v13, %v490_v8  ;;  %v641_v7 = vadd.f32 %v1615_v13, %v1708_v46  ;;  %v656_v46 = vadd.f32 %v1714_v60, %v1615_v13 }
 0x118   :  { %v792_v16 = vadd.f32 %v791_v10, %v790_v5  ;;  %v706_v20 = vmax.f32 %v496_v6, 0.0  ;;  %v536_v6 = vadd.f32 %v1619_v19, %v1615_v13  ;;  %v546_v19 = vadd.f32 %v1627_v29, %v1615_v13 }
 0x119   :  { %v705_v22 = vmax.f32 %v491_v11, 0.0  ;;  %v1184_v23 = vpop.f32.mrb[28].mxu0  ;;  %v1730_v35 = vpop.f32.mrb[28].mxu1  ;;  %v713_v11 = vmax.f32 %v531_v55, 0.0  ;;  %v561_v29 = vadd.f32 %v1615_v13, %v1644_v53 }
 0x11a   :  { %v794_v25 = vadd.f32 %v793_v18, %v792_v16  ;;  %v506_v28 = vadd.f32 %v1184_v23, %v1615_v13  ;;  %v500_v32 = vpop.f32.mrb[29].mxu0  ;;  %v1732_v37 = vpop.f32.mrb[29].mxu1  ;;  %v797_v38 = vsel %vm743_vm2, %v706_v20, 0.0 }
 0x11b   :  { %v795_v33 = vsel %vm743_vm2, %v705_v22, 0.0  ;;  %v501_v34 = vadd.f32 %v1615_v13, %v500_v32  ;;  %v671_v60 = vadd.f32 %v1615_v13, %v1732_v37 }
 0x11c   :  { %v796_v36 = vadd.f32 %v795_v33, %v794_v25  ;;  %v708_v40 = vmax.f32 %v506_v28, 0.0  ;;  %v714_v28 = vmax.f32 %v536_v6, 0.0  ;;  %v816_v33 = vsel %vm743_vm2, %v713_v11, 0.0 }
 0x11d   :  { %v707_v44 = vmax.f32 %v501_v34, 0.0  ;;  %v1187_v47 = vpop.f32.mrb[30].mxu0  ;;  %v715_v34 = vmax.f32 %v541_v21, 0.0 }
 0x11e   :  { %v798_v48 = vadd.f32 %v797_v38, %v796_v36  ;;  %v516_v49 = vadd.f32 %v1187_v47, %v1615_v13  ;;  %v510_v50 = vpop.f32.mrb[31].mxu0  ;;  %v801_v58 = vsel %vm743_vm2, %v708_v40, 0.0  ;;  %v818_v38 = vsel %vm743_vm2, %v714_v28, 0.0 }
 0x11f   :  { %v799_v52 = vsel %vm743_vm2, %v707_v44, 0.0  ;;  %v511_v54 = vadd.f32 %v1615_v13, %v510_v50  ;;  %v556_v44 = vadd.f32 %v1634_v39, %v1615_v13  ;;  %v716_v47 = vmax.f32 %v546_v19, 0.0 }
 0x120   :  { %v800_v56 = vadd.f32 %v799_v52, %v798_v48  ;;  %v710_v61 = vmax.f32 %v516_v49, 0.0  ;;  %v820_v48 = vsel %vm743_vm2, %v715_v34, 0.0  ;;  %v717_v49 = vmax.f32 %v551_v31, 0.0 }
 0x121   :  { %v709_v0 = vmax.f32 %v511_v54, 0.0  ;;  %v1190_v2 = vpop.f32.mrb[32].mxu0  ;;  %v718_v54 = vmax.f32 %v556_v44, 0.0  ;;  %v822_v55 = vsel %vm743_vm2, %v716_v47, 0.0  ;;  %v571_v39 = vadd.f32 %v1615_v13, %v1652_v1 }
 0x122   :  { %v802_v3 = vadd.f32 %v801_v58, %v800_v56  ;;  %v526_v4 = vadd.f32 %v1190_v2, %v1615_v13  ;;  %v520_v5 = vpop.f32.mrb[33].mxu0  ;;  %v805_v20 = vsel %vm743_vm2, %v710_v61, 0.0  ;;  %v824_v56 = vsel %vm743_vm2, %v717_v49, 0.0 }
 0x123   :  { %v803_v8 = vsel %vm743_vm2, %v709_v0, 0.0  ;;  %v521_v10 = vadd.f32 %v1615_v13, %v520_v5  ;;  %v719_v58 = vmax.f32 %v561_v29, 0.0  ;;  %v826_v0 = vsel %vm743_vm2, %v718_v54, 0.0 }
 0x124   :  { %v804_v16 = vadd.f32 %v803_v8, %v802_v3  ;;  %v712_v18 = vmax.f32 %v526_v4, 0.0  ;;  %v720_v3 = vmax.f32 %v566_v41, 0.0  ;;  %v576_v4 = vadd.f32 %v1650_v63, %v1615_v13 }
 0x125   :  { %v711_v22 = vmax.f32 %v521_v10, 0.0  ;;  %v828_v53 = vsel %vm743_vm2, %v719_v58, 0.0  ;;  %v721_v5 = vmax.f32 %v571_v39, 0.0  ;;  %v586_v1 = vadd.f32 %v1658_v12, %v1615_v13 }
 0x126   :  { %v1749_v23 = vadd.f32 %v805_v20, %v804_v16  ;;  %v814_v25 = vsel %vm743_vm2, %v712_v18, 0.0  ;;  %v830_v8 = vsel %vm743_vm2, %v720_v3, 0.0  ;;  %v722_v11 = vmax.f32 %v576_v4, 0.0 }
 0x127   :  { %v813_v32 = vsel %vm743_vm2, %v711_v22, 0.0  ;;  %v832_v21 = vsel %vm743_vm2, %v721_v5, 0.0  ;;  %v723_v16 = vmax.f32 %v581_v51, 0.0  ;;  %v591_v18 = vadd.f32 %v1615_v13, %v1668_v30 }
 0x128   :  { %v815_v36 = vadd.f32 %v814_v25, %v813_v32  ;;  %v724_v22 = vmax.f32 %v586_v1, 0.0  ;;  %v834_v25 = vsel %vm743_vm2, %v722_v11, 0.0  ;;  %v601_v12 = vadd.f32 %v1615_v13, %v1676_v45 }
 0x129   :  { %v836_v28 = vsel %vm743_vm2, %v723_v16, 0.0  ;;  %v725_v19 = vmax.f32 %v591_v18, 0.0  ;;  %v726_v31 = vmax.f32 %v596_v15, 0.0  ;;  %v616_v45 = vadd.f32 %v1682_v57, %v1615_v13 }
 0x12a   :  { %v817_v40 = vadd.f32 %v816_v33, %v815_v36  ;;  %v838_v33 = vsel %vm743_vm2, %v724_v22, 0.0  ;;  %v606_v36 = vadd.f32 %v1674_v43, %v1615_v13  ;;  %v729_v29 = vmax.f32 %v611_v27, 0.0 }
 0x12b   :  { %v840_v30 = vsel %vm743_vm2, %v725_v19, 0.0  ;;  %v842_v44 = vsel %vm743_vm2, %v726_v31, 0.0  ;;  %v730_v54 = vmax.f32 %v616_v45, 0.0  ;;  %v631_v57 = vadd.f32 %v1615_v13, %v1700_v26 }
 0x12c   :  { %v819_v50 = vadd.f32 %v818_v38, %v817_v40  ;;  %v727_v38 = vmax.f32 %v601_v12, 0.0  ;;  %v646_v26 = vadd.f32 %v1706_v42, %v1615_v13  ;;  %v661_v42 = vadd.f32 %v1615_v13, %v1724_v17 }
 0x12d   :  { %v850_v39 = vsel %vm743_vm2, %v730_v54, 0.0  ;;  %v733_v3 = vmax.f32 %v631_v57, 0.0  ;;  %v738_v15 = vmax.f32 %v656_v46, 0.0  ;;  %v807_v12 = vrot.slane %v1749_v23, 4  ;;  %v1054_v57 = vld [vmem:[%s1859_s4] ss:$0 sm:$0xff] }
 0x12e   :  { %v821_v52 = vadd.f32 %v820_v48, %v819_v50  ;;  %v728_v48 = vmax.f32 %v606_v36, 0.0  ;;  %v844_v49 = vsel %vm743_vm2, %v727_v38, 0.0  ;;  %v621_v50 = vadd.f32 %v1615_v13, %v1692_v9 }
 0x12f   :  { %v736_v11 = vmax.f32 %v646_v26, 0.0  ;;  %v676_v31 = vadd.f32 %v1730_v35, %v1615_v13 }
 0x130   :  { %v823_v61 = vadd.f32 %v822_v55, %v821_v52  ;;  %v846_v41 = vsel %vm743_vm2, %v728_v48, 0.0  ;;  %v848_v55 = vsel %vm743_vm2, %v729_v29, 0.0 }
 0x131   :  { %v742_v37 = vmax.f32 %v676_v31, 0.0 }
 0x132   :  { %v825_v2 = vadd.f32 %v824_v56, %v823_v61  ;;  %v731_v56 = vmax.f32 %v621_v50, 0.0 }
 0x133   :  { %v874_v48 = vsel %vm743_vm2, %v742_v37, 0.0 }
 0x134   :  { %v827_v6 = vadd.f32 %v826_v0, %v825_v2  ;;  %v732_v0 = vmax.f32 %v626_v59, 0.0  ;;  %v852_v9 = vsel %vm743_vm2, %v731_v56, 0.0  ;;  %v636_v2 = vadd.f32 %v1698_v24, %v1615_v13 }
 0x136   :  { %v829_v10 = vadd.f32 %v828_v53, %v827_v6  ;;  %v854_v4 = vsel %vm743_vm2, %v732_v0, 0.0  ;;  %v734_v51 = vmax.f32 %v636_v2, 0.0  ;;  %v856_v6 = vsel %vm743_vm2, %v733_v3, 0.0 }
 0x138   :  { %v831_v20 = vadd.f32 %v830_v8, %v829_v10  ;;  %v735_v8 = vmax.f32 %v641_v7, 0.0  ;;  %v651_v10 = vadd.f32 %v1615_v13, %v1716_v62 }
 0x13a   :  { %v833_v63 = vadd.f32 %v832_v21, %v831_v20  ;;  %v858_v21 = vsel %vm743_vm2, %v734_v51, 0.0  ;;  %v860_v16 = vsel %vm743_vm2, %v735_v8, 0.0  ;;  %v737_v18 = vmax.f32 %v651_v10, 0.0 }
 0x13c   :  { %v835_v32 = vadd.f32 %v834_v25, %v833_v63  ;;  %v862_v63 = vsel %vm743_vm2, %v736_v11, 0.0  ;;  %v864_v62 = vsel %vm743_vm2, %v737_v18, 0.0  ;;  %v666_v25 = vadd.f32 %v1722_v14, %v1615_v13 }
 0x13d   :  { %v808_v14 = vadd.f32 %v807_v12, %v1749_v23 }
 0x13e   :  { %v837_v34 = vadd.f32 %v836_v28, %v835_v32  ;;  %v739_v28 = vmax.f32 %v661_v42, 0.0  ;;  %v866_v32 = vsel %vm743_vm2, %v738_v15, 0.0 }
 0x140   :  { %v839_v40 = vadd.f32 %v838_v33, %v837_v34  ;;  %v740_v33 = vmax.f32 %v666_v25, 0.0  ;;  %v868_v34 = vsel %vm743_vm2, %v739_v28, 0.0 }
 0x142   :  { %v841_v47 = vadd.f32 %v840_v30, %v839_v40  ;;  %v741_v30 = vmax.f32 %v671_v60, 0.0  ;;  %v870_v27 = vsel %vm743_vm2, %v740_v33, 0.0 }
 0x144   :  { %v843_v52 = vadd.f32 %v842_v44, %v841_v47  ;;  %v872_v40 = vsel %vm743_vm2, %v741_v30, 0.0  ;;  %v809_v47 = vrot.slane %v808_v14, 2 }
 0x146   :  { %v845_v43 = vadd.f32 %v844_v49, %v843_v52  ;;  %v810_v29 = vadd.f32 %v809_v47, %v808_v14 }
 0x148   :  { %v847_v58 = vadd.f32 %v846_v41, %v845_v43  ;;  %v811_v13 = vrot.slane %v810_v29, 1 }
 0x14a   :  { %v849_v61 = vadd.f32 %v848_v55, %v847_v58  ;;  %v812_v54 = vadd.f32 %v811_v13, %v810_v29 }
 0x14c   :  { %v851_v53 = vadd.f32 %v850_v39, %v849_v61  ;;  %v883_v41 = vmul.f32 0.00390625, %v812_v54 }
 0x14e   :  { %v853_v5 = vadd.f32 %v852_v9, %v851_v53 }
 0x150   :  { %v855_v1 = vadd.f32 %v854_v4, %v853_v5 }
 0x152   :  { %v857_v24 = vadd.f32 %v856_v6, %v855_v1 }
 0x154   :  { %v859_v20 = vadd.f32 %v858_v21, %v857_v24 }
 0x156   :  { %v861_v22 = vadd.f32 %v860_v16, %v859_v20 }
 0x158   :  { %v863_v19 = vadd.f32 %v862_v63, %v861_v22 }
 0x15a   :  { %v865_v17 = vadd.f32 %v864_v62, %v863_v19 }
 0x15c   :  { %v867_v36 = vadd.f32 %v866_v32, %v865_v17 }
 0x15e   :  { %v869_v38 = vadd.f32 %v868_v34, %v867_v36 }
 0x160   :  { %v871_v44 = vadd.f32 %v870_v27, %v869_v38 }
 0x162   :  { %v873_v45 = vadd.f32 %v872_v40, %v871_v44 }
 0x164   :  { %v875_v49 = vadd.f32 %v874_v48, %v873_v45 }
 0x166   :  { %v876_v50 = vrot.slane %v875_v49, 4 }
 0x168   :  { %v877_v52 = vadd.f32 %v876_v50, %v875_v49 }
 0x16a   :  { %v878_v35 = vrot.slane %v877_v52, 2 }
 0x16c   :  { %v879_v43 = vadd.f32 %v878_v35, %v877_v52 }
 0x16e   :  { %v880_v23 = vrot.slane %v879_v43, 1 }
 0x170   :  { %v881_v59 = vadd.f32 %v880_v23, %v879_v43 }
 0x172   :  { %v884_v55 = vmul.f32 0.00390625, %v881_v59 }
 0x174   :  { %v899_v56 = vsel %vm898_vm4, %v884_v55, %v883_v41 }
 0x175   :  { %1245 = vmatmul.mubr.msk.f32.vlgmr.msra.gmra.mrb[30].mxu1 %vm743_vm2, %v899_v56 }
 0x248   :  { %v968_v58 = vpop.f32.mrb[30].mxu1 }
 0x249   :  { %v969_v39 = vadd.f32 %v1054_v57, %v968_v58  ;;  %v1246_v61 = vpop.f32.mrb[31].mxu1 }
 0x24b   :  { %973 = vst.msk [vmem:[#allocation2] sm:$0x3] %vm972_vm5, %v969_v39 }
 0x24c   :  { %1282 = shalt.err (!%p1279_p4)
}
 0x24d   :  { %s1283_s14 = scalar_lea.hbm %s1860_s5, 32 }
 0x24e   :  { %p1284_p5 = scmp.ne.s32.totalorder %s1860_s5, %s1283_s14  ;;  %p1287_p6 = scmp.lt.u32.totalorder %s1283_s14, %s1860_s5 }
 0x250   :  { %p1289_p7 = pnand %p1287_p6, %p1284_p5 }
 0x252   :  { %1292 = shalt.err (!%p1289_p7)
}
 0x253   :  { %983 = dma.vmem_to_hbm [thread:$0]  %s981_s1, 32, %s1860_s5, [#allocation3]  }
 0x254   :  { %1293 = dma.done.wait [#allocation3], 32  }
 0x255   :  { %1294 = vsyncadd [#allocation3], 4294967264 }
 0x256   :  { %987 = vsyncpa [#allocation3], 1 }

</bundles_post_ra>
